<compile_context>
chip_gen: v6e
topology: v6e:2x2x1
jax: 0.10.0
libtpu: 0.0.40
codegen_flags: <defaults>
</compile_context>

<pallas_src>
import functools

import jax
import jax.numpy as jnp
from jax.experimental import pallas as pl
from jax.experimental.pallas import tpu as pltpu


def _pick_tile(dim, candidates=(512, 256, 128)):
    """Largest candidate tile that divides `dim`, else full extent (always
    legal w.r.t. the (8,128) BlockSpec rule)."""
    for c in candidates:
        if dim % c == 0:
            return c
    return dim


def _vmem_limit(tile_bytes):
    # double-buffered tiles + headroom, clamped to a safe range for all gens
    return int(min(max(2 * tile_bytes + (8 << 20), 32 << 20), 64 << 20))


# ---------------------------------------------------------------------------
# Tiled GEMM (+ bias) kernel: used for the QKV and output projections.
# ---------------------------------------------------------------------------
def _matmul_bias_kernel(x_ref, w_ref, b_ref, o_ref, acc_ref):
    @pl.when(pl.program_id(2) == 0)
    def _():
        acc_ref[...] = jnp.zeros_like(acc_ref)

    # operands stay in their native dtype; accumulate in f32 on the MXU
    acc_ref[...] += jnp.dot(x_ref[...], w_ref[...],
                            preferred_element_type=jnp.float32)

    @pl.when(pl.program_id(2) == pl.num_programs(2) - 1)
    def _():
        o_ref[...] = (acc_ref[...] +
                      b_ref[...].astype(jnp.float32)).astype(o_ref.dtype)


def _linear(x, w, b):
    """x: [M, K] @ w: [K, N] + b: [1, N] -> [M, N]."""
    M, K = x.shape
    K2, N = w.shape
    assert K == K2
    tm = _pick_tile(M)
    tn = _pick_tile(N)
    tk = _pick_tile(K)
    isz = x.dtype.itemsize
    tile_bytes = (tm * tk + tk * tn + tn) * isz + tm * tn * (isz + 4)

    return pl.pallas_call(
        _matmul_bias_kernel,
        out_shape=jax.ShapeDtypeStruct((M, N), x.dtype),
        grid=(M // tm, N // tn, K // tk),
        in_specs=[
            pl.BlockSpec((tm, tk), lambda i, j, k: (i, k)),
            pl.BlockSpec((tk, tn), lambda i, j, k: (k, j)),
            pl.BlockSpec((1, tn), lambda i, j, k: (0, j)),
        ],
        out_specs=pl.BlockSpec((tm, tn), lambda i, j, k: (i, j)),
        scratch_shapes=[pltpu.VMEM((tm, tn), jnp.float32)],
        compiler_params=pltpu.CompilerParams(
            dimension_semantics=("parallel", "parallel", "arbitrary"),
            vmem_limit_bytes=_vmem_limit(tile_bytes)),
        cost_estimate=pl.CostEstimate(
            flops=2 * M * N * K,
            transcendentals=0,
            bytes_accessed=(M * K + K * N + N + M * N) * isz),
    )(x, w, b)


# ---------------------------------------------------------------------------
# Flash-attention kernel (online softmax, streamed KV).
# ---------------------------------------------------------------------------
def _flash_attn_kernel(q_ref, k_ref, v_ref, o_ref, m_sc, l_sc, acc_sc, *,
                       scale):
    ki = pl.program_id(2)

    @pl.when(ki == 0)
    def _():
        m_sc[...] = jnp.full(m_sc.shape, -jnp.inf, dtype=m_sc.dtype)
        l_sc[...] = jnp.zeros_like(l_sc)
        acc_sc[...] = jnp.zeros_like(acc_sc)

    q = q_ref[0] * scale          # (TQ, D), kept in the input dtype
    k = k_ref[0]                  # (TK, D)
    v = v_ref[0]                  # (TK, D)

    # scores in f32: contract last dims (no explicit transpose of k)
    s = jax.lax.dot_general(q, k, (((1,), (1,)), ((), ())),
                            preferred_element_type=jnp.float32)   # (TQ, TK)

    m_prev = m_sc[...]
    m_new = jnp.maximum(m_prev, jnp.max(s, axis=-1, keepdims=True))
    alpha = jnp.exp(m_prev - m_new)
    p = jnp.exp(s - m_new)                                        # (TQ, TK) f32
    l_sc[...] = alpha * l_sc[...] + jnp.sum(p, axis=-1, keepdims=True)
    acc_sc[...] = alpha * acc_sc[...] + jnp.dot(
        p.astype(v.dtype), v, preferred_element_type=jnp.float32)
    m_sc[...] = m_new

    @pl.when(ki == pl.num_programs(2) - 1)
    def _():
        o_ref[0] = (acc_sc[...] *
                    pl.reciprocal(l_sc[...], approx=True)).astype(o_ref.dtype)


def _flash_attention(q, k, v, scale):
    """q, k, v: [B*H, N, D] -> [B*H, N, D]."""
    BH, N, D = q.shape
    tq = _pick_tile(N)
    tk = _pick_tile(N)
    isz = q.dtype.itemsize
    tile_bytes = (tq * D + 2 * tk * D + tq * D) * isz \
        + (tq * tk + tq * D + 2 * tq) * 4

    kernel = functools.partial(_flash_attn_kernel, scale=scale)
    return pl.pallas_call(
        kernel,
        out_shape=jax.ShapeDtypeStruct((BH, N, D), q.dtype),
        grid=(BH, N // tq, N // tk),
        in_specs=[
            pl.BlockSpec((1, tq, D), lambda b, qi, ki: (b, qi, 0)),
            pl.BlockSpec((1, tk, D), lambda b, qi, ki: (b, ki, 0)),
            pl.BlockSpec((1, tk, D), lambda b, qi, ki: (b, ki, 0)),
        ],
        out_specs=pl.BlockSpec((1, tq, D), lambda b, qi, ki: (b, qi, 0)),
        scratch_shapes=[
            pltpu.VMEM((tq, 1), jnp.float32),    # running max m
            pltpu.VMEM((tq, 1), jnp.float32),    # running denom l
            pltpu.VMEM((tq, D), jnp.float32),    # output accumulator
        ],
        compiler_params=pltpu.CompilerParams(
            dimension_semantics=("parallel", "parallel", "arbitrary"),
            vmem_limit_bytes=_vmem_limit(tile_bytes)),
        cost_estimate=pl.CostEstimate(
            flops=4 * BH * N * N * D,
            transcendentals=BH * N * N,
            bytes_accessed=4 * BH * N * D * isz),
    )(q, k, v)


# ---------------------------------------------------------------------------
# Full forward: qkv proj -> flash attention -> head merge -> output proj.
# ---------------------------------------------------------------------------
def attention_forward(x, w_qkv, w_proj, b_proj, num_heads):
    """x: [B, N, C]; w_qkv: [C, 3C] ([in,out]); w_proj: [C, C]; b_proj: [1, C]."""
    B, N, C = x.shape
    assert C % num_heads == 0
    D = C // num_heads
    scale = D ** -0.5

    # 1) qkv = self.qkv(x); qkv_bias=False in the default config -> zero bias
    qkv = _linear(x.reshape(B * N, C), w_qkv,
                  jnp.zeros((1, 3 * C), dtype=x.dtype))            # (B*N, 3C)

    # 2) qkv.view(B, N, 3, H, D).permute(2, 0, 3, 1, 4).unbind(0)
    qkv = qkv.reshape(B, N, 3, num_heads, D)
    q = qkv[:, :, 0].transpose(0, 2, 1, 3).reshape(B * num_heads, N, D)
    k = qkv[:, :, 1].transpose(0, 2, 1, 3).reshape(B * num_heads, N, D)
    v = qkv[:, :, 2].transpose(0, 2, 1, 3).reshape(B * num_heads, N, D)

    # 3) scaled-dot-product attention with f32 softmax (flash / online style)
    o = _flash_attention(q, k, v, scale)                           # (B*H, N, D)

    # 4) x.transpose(1, 2).reshape(B, N, C): merge heads back to channels
    o = o.reshape(B, num_heads, N, D).transpose(0, 2, 1, 3).reshape(B * N, C)

    # 5) x = self.proj(x)
    y = _linear(o, w_proj, b_proj)                                 # (B*N, C)
    # TODO(synk): kernel_size / shift_window windowed attention, RoPE
    # (rotate_3d) and qk_norm are not implemented; the default Attention
    # config does not use them.
    return y.reshape(B, N, C)


def attention_reference(x, w_qkv, w_proj, b_proj, num_heads):
    """Pure-JAX replica of the PyTorch forward (non-flash branch)."""
    B, N, C = x.shape
    D = C // num_heads
    scale = D ** -0.5
    qkv = x @ w_qkv                                                # (B, N, 3C)
    qkv = qkv.reshape(B, N, 3, num_heads, D).transpose(2, 0, 3, 1, 4)
    q, k, v = qkv[0], qkv[1], qkv[2]                               # (B, H, N, D)
    attn = (q * scale) @ jnp.swapaxes(k, -2, -1)
    attn = jax.nn.softmax(attn.astype(jnp.float32), axis=-1).astype(x.dtype)
    out = attn @ v                                                 # (B, H, N, D)
    out = jnp.swapaxes(out, 1, 2).reshape(B, N, C)
    return out @ w_proj + b_proj[0]


if __name__ == "__main__":
    B, N, dim, num_heads = 2, 16, 32, 4

    key = jax.random.PRNGKey(0)
    kx, kqkv, kproj, kb = jax.random.split(key, 4)

    x = jax.random.normal(kx, (B, N, dim), dtype=jnp.float32)
    # Parameter shapes from Attention.__init__ (weights stored as [in, out]):
    #   qkv:  Linear(dim, 3*dim, bias=False) -> [dim, 3*dim]
    #   proj: Linear(dim, dim)               -> [dim, dim], bias [dim]
    w_qkv = jax.random.normal(kqkv, (dim, 3 * dim), dtype=jnp.float32) * (dim ** -0.5)
    w_proj = jax.random.normal(kproj, (dim, dim), dtype=jnp.float32) * (dim ** -0.5)
    b_proj = jax.random.normal(kb, (1, dim), dtype=jnp.float32) * 0.02

    out = attention_forward(x, w_qkv, w_proj, b_proj, num_heads)
    out = jax.block_until_ready(out)

    ref = attention_reference(x, w_qkv, w_proj, b_proj, num_heads)
    assert out.shape == (B, N, dim)
    # tolerance accounts for the EUP approximate-reciprocal softmax denominator
    assert jnp.allclose(out, ref, atol=2e-2, rtol=2e-2), "mismatch vs reference"

    print("KERNEL_OK")
</pallas_src>

<mosaic_0001>
module attributes {stable_mosaic.version = 11 : i64} {
  func.func @_matmul_bias_kernel(%arg0: i32, %arg1: i32, %arg2: i32, %arg3: memref<32x32xf32, #tpu.memory_space<vmem>>, %arg4: memref<32x96xf32, #tpu.memory_space<vmem>>, %arg5: memref<1x96xf32, #tpu.memory_space<vmem>>, %arg6: memref<32x96xf32, #tpu.memory_space<vmem>>, %arg7: memref<32x96xf32, #tpu.memory_space<vmem>>) attributes {dimension_semantics = [#tpu.dimension_semantics<parallel>, #tpu.dimension_semantics<parallel>, #tpu.dimension_semantics<arbitrary>], iteration_bounds = array<i64: 1, 1, 1>, scalar_prefetch = 0 : i64, scratch_operands = 1 : i64, tpu.core_type = #tpu.core_type<tc>, window_params = [{transform_indices = @transform_0, window_bounds = array<i64: 32, 32>}, {transform_indices = @transform_1, window_bounds = array<i64: 32, 96>}, {transform_indices = @transform_2, window_bounds = array<i64: 1, 96>}, {transform_indices = @transform_3, window_bounds = array<i64: 32, 96>}]} {
    %c0_i32 = arith.constant 0 : i32
    %0 = arith.cmpi eq, %arg2, %c0_i32 : i32
    %1 = arith.extui %0 : i1 to i32
    %c0_i32_0 = arith.constant 0 : i32
    %2 = arith.cmpi ne, %1, %c0_i32_0 : i32
    scf.if %2 {
      %cst_10 = arith.constant 0.000000e+00 : f32
      %12 = vector.broadcast %cst_10 : f32 to vector<32x96xf32>
      %c0_11 = arith.constant 0 : index
      %c0_12 = arith.constant 0 : index
      %13 = vector.load %arg7[%c0_11, %c0_12] : memref<32x96xf32, #tpu.memory_space<vmem>>, vector<32x96xf32>
      tpu.vector_store %arg7[%c0_11, %c0_12], %12 {strides = array<i32>} : memref<32x96xf32, #tpu.memory_space<vmem>>, vector<32x96xf32>,
    } else {
    }
    %c0 = arith.constant 0 : index
    %c0_1 = arith.constant 0 : index
    %3 = vector.load %arg7[%c0, %c0_1] : memref<32x96xf32, #tpu.memory_space<vmem>>, vector<32x96xf32>
    %c0_2 = arith.constant 0 : index
    %c0_3 = arith.constant 0 : index
    %4 = vector.load %arg3[%c0_2, %c0_3] : memref<32x32xf32, #tpu.memory_space<vmem>>, vector<32x32xf32>
    %c0_4 = arith.constant 0 : index
    %c0_5 = arith.constant 0 : index
    %5 = vector.load %arg4[%c0_4, %c0_5] : memref<32x96xf32, #tpu.memory_space<vmem>>, vector<32x96xf32>
    %cst = arith.constant dense<0.000000e+00> : vector<32x96xf32>
    %6 = tpu.matmul %4, %5, %cst {dimension_numbers = #tpu.dot_dimension_numbers<[1], [0], [0], [1], [0, 0, 1, 1], [], []>} : vector<32x32xf32>, vector<32x96xf32>, vector<32x96xf32> -> vector<32x96xf32>
    %7 = arith.addf %3, %6 : vector<32x96xf32>
    %c0_6 = arith.constant 0 : index
    %c0_7 = arith.constant 0 : index
    %8 = vector.load %arg7[%c0_6, %c0_7] : memref<32x96xf32, #tpu.memory_space<vmem>>, vector<32x96xf32>
    tpu.vector_store %arg7[%c0_6, %c0_7], %7 {strides = array<i32>} : memref<32x96xf32, #tpu.memory_space<vmem>>, vector<32x96xf32>,
    %c0_i32_8 = arith.constant 0 : i32
    %9 = arith.cmpi eq, %arg2, %c0_i32_8 : i32
    %10 = arith.extui %9 : i1 to i32
    %c0_i32_9 = arith.constant 0 : i32
    %11 = arith.cmpi ne, %10, %c0_i32_9 : i32
    scf.if %11 {
      %c0_10 = arith.constant 0 : index
      %c0_11 = arith.constant 0 : index
      %12 = vector.load %arg7[%c0_10, %c0_11] : memref<32x96xf32, #tpu.memory_space<vmem>>, vector<32x96xf32>
      %c0_12 = arith.constant 0 : index
      %c0_13 = arith.constant 0 : index
      %13 = vector.load %arg5[%c0_12, %c0_13] : memref<1x96xf32, #tpu.memory_space<vmem>>, vector<1x96xf32>
      %14 = vector.broadcast %13 : vector<1x96xf32> to vector<32x96xf32>
      %15 = arith.addf %12, %14 : vector<32x96xf32>
      %c0_14 = arith.constant 0 : index
      %c0_15 = arith.constant 0 : index
      %16 = vector.load %arg6[%c0_14, %c0_15] : memref<32x96xf32, #tpu.memory_space<vmem>>, vector<32x96xf32>
      tpu.vector_store %arg6[%c0_14, %c0_15], %15 {strides = array<i32>} : memref<32x96xf32, #tpu.memory_space<vmem>>, vector<32x96xf32>,
    } else {
    }
    return
  }
  func.func @transform_0(%arg0: i32, %arg1: i32, %arg2: i32) -> (i32, i32) {
    %c0_i32 = arith.constant 0 : i32
    return %arg0, %arg2 : i32, i32
  }
  func.func @transform_1(%arg0: i32, %arg1: i32, %arg2: i32) -> (i32, i32) {
    %c0_i32 = arith.constant 0 : i32
    return %arg2, %arg1 : i32, i32
  }
  func.func @transform_2(%arg0: i32, %arg1: i32, %arg2: i32) -> (i32, i32) {
    %c0_i32 = arith.constant 0 : i32
    %c0_i32_0 = arith.constant 0 : i32
    return %c0_i32, %arg1 : i32, i32
  }
  func.func @transform_3(%arg0: i32, %arg1: i32, %arg2: i32) -> (i32, i32) {
    %c0_i32 = arith.constant 0 : i32
    return %arg0, %arg1 : i32, i32
  }
}

</mosaic_0001>

<bundles_post_ra>
// kernel: tpu_custom_call.1
= control target key start
LH: loop header
LB: loop body
LE: loop exit
PB: predicated region body
PF: predicated region fallthrough
CT: control target
= control target key end

     0   :  { %8 = vsyncpa [#allocation4], 0  ;;  %s377_s0 = inlined_call_operand.hbm [shape: f32[32,32], index: 0, kind: input, shape index: {}]   ;;  %s378_s1 = inlined_call_operand.hbm [shape: f32[32,96], index: 1, kind: input, shape index: {}]   ;;  %s379_s2 = inlined_call_operand.vmem [shape: f32[1,96], index: 2, kind: input, shape index: {}]   ;;  %s380_s3 = inlined_call_operand.hbm [shape: f32[32,96], index: 3, kind: output, shape index: {}]  }
   0x1   :  { %9 = vsyncpa [#allocation7], 0 }
   0x2   :  { %10 = vsyncpa [#allocation5], 0  ;;  %s318_s12 = smov [#allocation3]  }
   0x3   :  { %s16_s13 = sshll.u32 %s318_s12, 4  ;;  %s17_s13 = int_to_ptr.vmem [resolvable:$true] %s16_s13 }
   0x4   :  { %s260_s14 = scalar_lea.vmem %s17_s13, 512  ;;  %p265_p1 = scmp.lt.s32.totalorder %s17_s13, %s17_s13 }
   0x5   :  { %p261_p0 = scmp.ne.s32.totalorder %s17_s13, %s260_s14  ;;  %p266_p2 = scmp.lt.s32.totalorder %s260_s14, %s260_s14 }
   0x7   :  { %p267_p3 = por %p266_p2, %p265_p1 }
   0x9   :  { %p268_p4 = pnand %p267_p3, %p261_p0 }
   0xb   :  { %271 = shalt.err (!%p268_p4)
}
   0xc   :  { %s319_s15 = smov 128   ;;  %s320_s16 = smov 8  }
   0xd   :  { %22 = dma.hbm_to_vmem [thread:$0]  %s377_s0, 512, %s17_s13, [#allocation4], %s319_s15, %s319_s15, %s320_s16  }
   0xe   :  { %s321_s19 = smov [#allocation6]  }
   0xf   :  { %s28_s20 = sshll.u32 %s321_s19, 4  ;;  %s29_s20 = int_to_ptr.vmem [resolvable:$true] %s28_s20 }
  0x10   :  { %s280_s21 = scalar_lea.vmem %s29_s20, 512  ;;  %p285_p6 = scmp.lt.s32.totalorder %s29_s20, %s29_s20 }
  0x11   :  { %p281_p5 = scmp.ne.s32.totalorder %s29_s20, %s280_s21  ;;  %p286_p7 = scmp.lt.s32.totalorder %s280_s21, %s280_s21 }
  0x13   :  { %p287_p8 = por %p286_p7, %p285_p6 }
  0x15   :  { %p288_p9 = pnand %p287_p8, %p281_p5 }
  0x17   :  { %291 = shalt.err (!%p288_p9)
}
  0x18   :  { %34 = dma.hbm_to_vmem [thread:$0]  %s378_s1, 512, %s29_s20, [#allocation7], %s319_s15, %s319_s15, %s320_s16  }
  0x19   :  { %312 = dma.done.wait [#allocation4], 512  }
  0x1a   :  { %313 = vsyncadd [#allocation4], 4294966784 }
  0x1b   :  { %314 = dma.done.wait [#allocation7], 512  }
  0x1c   :  { %315 = vsyncadd [#allocation7], 4294966784  ;;  %vm47_vm0 = vcmask 785408   ;;  %v322_v0 = vmov 0.0   ;;  %v63_v1 = vld [vmem:[#allocation6 + $0x18] sm:$0xff]  ;;  %v62_v2 = vld [vmem:[#allocation6 + $0x10] sm:$0xff] }
  0x1d   :  { %49 = vst.msk [vmem:[#allocation2 + $0x8] sm:$0xff] %vm47_vm0, %v322_v0  ;;  %48 = vst.msk [vmem:[#allocation2] sm:$0xff] %vm47_vm0, %v322_v0  ;;  %224 = vmatprep.subr.mxu0 %v63_v1  ;;  %238 = vmatprep.subr.mxu1 %v63_v1  ;;  %v61_v3 = vld [vmem:[#allocation6 + $0x8] sm:$0xff]  ;;  %v60_v4 = vld [vmem:[#allocation6] sm:$0xff]  ;;  %vm64_vm1 = vcmask 261120   ;;  %s323_s24 = smov [#allocation8]  }
  0x1e   :  { %50 = vst.msk [vmem:[#allocation2 + $0x10] sm:$0xff] %vm47_vm0, %v322_v0  ;;  %51 = vst.msk [vmem:[#allocation2 + $0x18] sm:$0xff] %vm47_vm0, %v322_v0  ;;  %225 = vmatpush3.msra.mxu0 %v63_v1  ;;  %242 = vmatpush3.msra.mxu1 %v63_v1  ;;  %v56_v5 = vld [vmem:[#allocation3] sm:$0xff]  ;;  %v58_v6 = vld [vmem:[#allocation3 + $0x10] sm:$0xff]  ;;  %s198_s25 = sshll.u32 %s323_s24, 4  ;;  %s199_s25 = int_to_ptr.vmem [resolvable:$true] %s198_s25 }
  0x1f   :  { %226 = vmatprep.subr.mxu0 %v62_v2  ;;  %239 = vmatprep.subr.mxu1 %v62_v2  ;;  %v57_v7 = vld [vmem:[#allocation3 + $0x8] sm:$0xff]  ;;  %v59_v8 = vld [vmem:[#allocation3 + $0x18] sm:$0xff]  ;;  %v215_v21 = vld [vmem:[%s379_s2] ss:$0 sm:$0xff]  ;;  %s292_s2 = scalar_lea.vmem %s199_s25, 512  ;;  %p297_p11 = scmp.lt.s32.totalorder %s199_s25, %s199_s25 }
  0x20   :  { %227 = vmatpush3.msra.mxu0 %v62_v2  ;;  %243 = vmatpush3.msra.mxu1 %v62_v2  ;;  %p293_p10 = scmp.ne.s32.totalorder %s199_s25, %s292_s2  ;;  %p298_p12 = scmp.lt.s32.totalorder %s292_s2, %s292_s2 }
  0x21   :  { %228 = vmatprep.subr.mxu0 %v61_v3  ;;  %240 = vmatprep.subr.mxu1 %v61_v3 }
  0x22   :  { %229 = vmatpush3.msra.mxu0 %v61_v3  ;;  %244 = vmatpush3.msra.mxu1 %v61_v3  ;;  %p299_p13 = por %p298_p12, %p297_p11 }
  0x23   :  { %230 = vmatprep.subr.mxu0 %v60_v4  ;;  %241 = vmatprep.subr.mxu1 %v60_v4 }
  0x24   :  { %231 = vmatpush3.msra.mxu0 %v60_v4  ;;  %245 = vmatpush3.msra.mxu1 %v60_v4  ;;  %v53_v9 = vld [vmem:[#allocation2 + $0x8] sm:$0xff]  ;;  %v52_v13 = vld [vmem:[#allocation2] sm:$0xff]  ;;  %p300_p0 = pnand %p299_p13, %p293_p10 }
  0x25   :  { %232 = vmatprep.mubr.msk.f32.mxu0 %vm64_vm1, %v56_v5  ;;  %235 = vmatprep.mubr.msk.f32.mxu1 %vm64_vm1, %v58_v6  ;;  %v55_v10 = vld [vmem:[#allocation2 + $0x18] sm:$0xff]  ;;  %v54_v14 = vld [vmem:[#allocation2 + $0x10] sm:$0xff] }
  0x26   :  { %233 = vmatmul.mubr.msk.f32.vlgmr.msra.gmra.mxu0 %vm64_vm1, %v57_v7  ;;  %236 = vmatmul.mubr.msk.f32.vlgmr.msra.gmra.mxu1 %vm64_vm1, %v59_v8 }
  0xe6   :  { %v234_v11 = vpop.f32.mrf.mxu0  ;;  %v237_v12 = vpop.f32.mrf.mxu1 }
  0xe7   :  { %v163_v15 = vadd.f32 %v234_v11, %v53_v9  ;;  %v165_v16 = vadd.f32 %v237_v12, %v55_v10 }
  0xe8   :  { %v143_v17 = vpop.f32.mrf.mxu0  ;;  %v153_v18 = vpop.f32.mrf.mxu1 }
  0xe9   :  { %168 = vst.msk [vmem:[#allocation2 + $0x8] sm:$0xff] %vm47_vm0, %v163_v15  ;;  %170 = vst.msk [vmem:[#allocation2 + $0x18] sm:$0xff] %vm47_vm0, %v165_v16  ;;  %v162_v19 = vadd.f32 %v143_v17, %v52_v13  ;;  %v164_v20 = vadd.f32 %v153_v18, %v54_v14 }
  0xeb   :  { %167 = vst.msk [vmem:[#allocation2] sm:$0xff] %vm47_vm0, %v162_v19  ;;  %169 = vst.msk [vmem:[#allocation2 + $0x10] sm:$0xff] %vm47_vm0, %v164_v20 }
  0xf0   :  { %v175_v22 = vld [vmem:[#allocation2 + $0x8] sm:$0xff]  ;;  %v177_v23 = vld [vmem:[#allocation2 + $0x18] sm:$0xff] }
  0xf1   :  { %v186_v24 = vadd.f32 %v215_v21, %v175_v22  ;;  %v188_v25 = vadd.f32 %v215_v21, %v177_v23 }
  0xf2   :  { %v174_v26 = vld [vmem:[#allocation2] sm:$0xff]  ;;  %v176_v27 = vld [vmem:[#allocation2 + $0x10] sm:$0xff] }
  0xf3   :  { %v185_v28 = vadd.f32 %v215_v21, %v174_v26  ;;  %v187_v29 = vadd.f32 %v215_v21, %v176_v27  ;;  %190 = vst.msk [vmem:[#allocation8 + $0x8] sm:$0xff] %vm47_vm0, %v186_v24  ;;  %192 = vst.msk [vmem:[#allocation8 + $0x18] sm:$0xff] %vm47_vm0, %v188_v25 }
  0xf5   :  { %189 = vst.msk [vmem:[#allocation8] sm:$0xff] %vm47_vm0, %v185_v28  ;;  %191 = vst.msk [vmem:[#allocation8 + $0x10] sm:$0xff] %vm47_vm0, %v187_v29 }
  0xf6   :  { %303 = shalt.err (!%p300_p0)
}
  0xf7   :  { %204 = dma.vmem_to_hbm [thread:$0]  %s199_s25, 512, %s380_s3, [#allocation5], %s319_s15, %s319_s15, %s320_s16  }
  0xf8   :  { %316 = dma.done.wait [#allocation5], 512  }
  0xf9   :  { %317 = vsyncadd [#allocation5], 4294966784 }
  0xfa   :  { %208 = vsyncpa [#allocation4], 1 }
  0xfb   :  { %209 = vsyncpa [#allocation7], 1 }
  0xfc   :  { %210 = vsyncpa [#allocation5], 1 }

</bundles_post_ra>
